<compile_context>
chip_gen: v7x
topology: tpu7x:2x2x1
jax: 0.10.0
libtpu: 0.0.40
codegen_flags: <defaults>
</compile_context>

<pallas_src>
import jax
import jax.numpy as jnp
from jax.experimental import pallas as pl
from jax.experimental.pallas import tpu as pltpu

IN_FEATURES = 4
OUT_FEATURES = 4
LANE = 128          # TPU lane width — batch tiles are multiples of this
TILE_CAP = 4096     # max batch columns per grid step (4*4096*4B = 64 KiB/block)


def _generator_kernel(w_ref, b_ref, z_ref, o_ref):
    """Fused linear(4,4) + sigmoid in a feature-major (batch-on-lanes) layout.

    w_ref : SMEM (16,) f32   scalar-prefetched weight, row-major (out, in)
    b_ref : SMEM (4,)  f32   scalar-prefetched bias
    z_ref : VMEM (IN, TB)    noise tile, batch on lanes
    o_ref : VMEM (OUT, TB)   sigmoid output tile, batch on lanes
    """
    z = z_ref[...]                                    # (IN, TB) float32

    rows = []
    for o in range(OUT_FEATURES):                     # static unroll: 4 rows
        # logits_row_o = b[o] + sum_k w[o, k] * z[k, :]   (scalar-broadcast FMA)
        acc = b_ref[o] + w_ref[o * IN_FEATURES] * z[0:1, :]
        for k in range(1, IN_FEATURES):
            acc = acc + w_ref[o * IN_FEATURES + k] * z[k:k + 1, :]
        rows.append(acc)
    logits = jnp.concatenate(rows, axis=0)            # (OUT, TB)

    # sigmoid = 1 / (1 + exp(-x)); exp goes to the EUP, stores are lane-dense.
    o_ref[...] = 1.0 / (1.0 + jnp.exp(-logits))


def _round_up(n, m):
    return ((n + m - 1) // m) * m


def _cdiv(a, b):
    return -(-a // b)


def generator_forward(x, params, *, key):
    """Replicates Generator.forward: x is only consulted for its batch size.

    Returns (G_output, z_used), both batch-major, so the caller can
    cross-check against a pure-JAX reference.
    """
    bs = x.shape[0]

    # ---- tiling: lane-dense columns, >=2 grid steps when possible (v7x) ----
    padded = _round_up(bs, LANE)
    ntiles = max(_cdiv(padded, TILE_CAP), 2 if padded >= 2 * LANE else 1)
    tb = _round_up(_cdiv(padded, ntiles), LANE)
    padded = ntiles * tb
    grid = (ntiles,)

    # Noise drawn feature-major directly: (IN, padded_bs), batch on lanes.
    z = jax.random.normal(key, (IN_FEATURES, padded), dtype=jnp.float32)

    out = pl.pallas_call(
        _generator_kernel,
        out_shape=jax.ShapeDtypeStruct((OUT_FEATURES, padded), jnp.float32),
        grid_spec=pltpu.PrefetchScalarGridSpec(
            num_scalar_prefetch=2,                    # w_flat, b -> SMEM
            grid=grid,
            in_specs=[
                pl.BlockSpec((IN_FEATURES, tb), lambda i, w, b: (0, i)),
            ],
            out_specs=pl.BlockSpec((OUT_FEATURES, tb), lambda i, w, b: (0, i)),
        ),
        compiler_params=pltpu.CompilerParams(
            dimension_semantics=("parallel",),        # megacore-shard batch tiles
        ),
    )(params["w_flat"], params["b"], z)

    # Back to batch-major (bs, 4) for the caller; drop lane padding.
    return out[:, :bs].T, z[:, :bs].T


def init_params(key):
    """nn.Linear(4, 4)-shaped params; flattened copy hoisted here (no per-call
    reshape dispatches)."""
    kw, kb = jax.random.split(key)
    bound = 1.0 / jnp.sqrt(IN_FEATURES)
    w = jax.random.uniform(kw, (OUT_FEATURES, IN_FEATURES),
                           minval=-bound, maxval=bound, dtype=jnp.float32)
    b = jax.random.uniform(kb, (OUT_FEATURES,),
                           minval=-bound, maxval=bound, dtype=jnp.float32)
    return {
        "w": w,                                   # nn.Linear layout (out, in)
        "b": b,                                   # (out,)
        "w_flat": w.reshape(-1),                  # (16,) row-major for SMEM
    }


if __name__ == "__main__":
    key = jax.random.PRNGKey(0)
    k_param, k_x, k_z = jax.random.split(key, 3)

    params = init_params(k_param)

    # x's contents are irrelevant to forward(); only its batch dim matters.
    x = jax.random.normal(k_x, (8, IN_FEATURES), dtype=jnp.float32)

    g_output, z_used = generator_forward(x, params, key=k_z)
    g_output = jax.block_until_ready(g_output)

    # sanity: shape (bs, 4), values in (0, 1) from sigmoid, finite
    assert g_output.shape == (8, OUT_FEATURES)
    assert bool(jnp.all(jnp.isfinite(g_output)))
    assert bool(jnp.all((g_output > 0.0) & (g_output < 1.0)))

    # cross-check the fused linear+sigmoid against pure JAX with the exact
    # noise the kernel consumed.
    ref = jax.nn.sigmoid(z_used @ params["w"].T + params["b"])
    assert bool(jnp.allclose(g_output, ref, atol=1e-5, rtol=1e-5)), float(
        jnp.max(jnp.abs(g_output - ref)))

    print("KERNEL_OK")
</pallas_src>

<mosaic_0001>
module attributes {stable_mosaic.version = 11 : i64} {
  func.func @_generator_kernel(%arg0: i32, %arg1: memref<16xf32, #tpu.memory_space<smem>>, %arg2: memref<4xf32, #tpu.memory_space<smem>>, %arg3: memref<4x128xf32, #tpu.memory_space<vmem>>, %arg4: memref<4x128xf32, #tpu.memory_space<vmem>>) attributes {dimension_semantics = [#tpu.dimension_semantics<parallel>], iteration_bounds = array<i64: 1>, scalar_prefetch = 2 : i64, scratch_operands = 0 : i64, tpu.core_type = #tpu.core_type<tc>, window_params = [{transform_indices = @transform_0, window_bounds = array<i64: 4, 128>}, {transform_indices = @transform_1, window_bounds = array<i64: 4, 128>}]} {
    %c0 = arith.constant 0 : index
    %c0_0 = arith.constant 0 : index
    %0 = vector.load %arg3[%c0, %c0_0] : memref<4x128xf32, #tpu.memory_space<vmem>>, vector<4x128xf32>
    %c0_1 = arith.constant 0 : index
    %1 = memref.load %arg2[%c0_1] : memref<4xf32, #tpu.memory_space<smem>>
    %c0_2 = arith.constant 0 : index
    %2 = memref.load %arg1[%c0_2] : memref<16xf32, #tpu.memory_space<smem>>
    %3 = vector.extract_strided_slice %0 {offsets = [0, 0], sizes = [1, 128], strides = [1, 1]} : vector<4x128xf32> to vector<1x128xf32>
    %4 = vector.broadcast %2 : f32 to vector<1x128xf32>
    %5 = arith.mulf %4, %3 : vector<1x128xf32>
    %6 = vector.broadcast %1 : f32 to vector<1x128xf32>
    %7 = arith.addf %6, %5 : vector<1x128xf32>
    %c1 = arith.constant 1 : index
    %8 = memref.load %arg1[%c1] : memref<16xf32, #tpu.memory_space<smem>>
    %9 = vector.extract_strided_slice %0 {offsets = [1, 0], sizes = [1, 128], strides = [1, 1]} : vector<4x128xf32> to vector<1x128xf32>
    %10 = vector.broadcast %8 : f32 to vector<1x128xf32>
    %11 = arith.mulf %10, %9 : vector<1x128xf32>
    %12 = arith.addf %7, %11 : vector<1x128xf32>
    %c2 = arith.constant 2 : index
    %13 = memref.load %arg1[%c2] : memref<16xf32, #tpu.memory_space<smem>>
    %14 = vector.extract_strided_slice %0 {offsets = [2, 0], sizes = [1, 128], strides = [1, 1]} : vector<4x128xf32> to vector<1x128xf32>
    %15 = vector.broadcast %13 : f32 to vector<1x128xf32>
    %16 = arith.mulf %15, %14 : vector<1x128xf32>
    %17 = arith.addf %12, %16 : vector<1x128xf32>
    %c3 = arith.constant 3 : index
    %18 = memref.load %arg1[%c3] : memref<16xf32, #tpu.memory_space<smem>>
    %19 = vector.extract_strided_slice %0 {offsets = [3, 0], sizes = [1, 128], strides = [1, 1]} : vector<4x128xf32> to vector<1x128xf32>
    %20 = vector.broadcast %18 : f32 to vector<1x128xf32>
    %21 = arith.mulf %20, %19 : vector<1x128xf32>
    %22 = arith.addf %17, %21 : vector<1x128xf32>
    %c1_3 = arith.constant 1 : index
    %23 = memref.load %arg2[%c1_3] : memref<4xf32, #tpu.memory_space<smem>>
    %c4 = arith.constant 4 : index
    %24 = memref.load %arg1[%c4] : memref<16xf32, #tpu.memory_space<smem>>
    %25 = vector.extract_strided_slice %0 {offsets = [0, 0], sizes = [1, 128], strides = [1, 1]} : vector<4x128xf32> to vector<1x128xf32>
    %26 = vector.broadcast %24 : f32 to vector<1x128xf32>
    %27 = arith.mulf %26, %25 : vector<1x128xf32>
    %28 = vector.broadcast %23 : f32 to vector<1x128xf32>
    %29 = arith.addf %28, %27 : vector<1x128xf32>
    %c5 = arith.constant 5 : index
    %30 = memref.load %arg1[%c5] : memref<16xf32, #tpu.memory_space<smem>>
    %31 = vector.extract_strided_slice %0 {offsets = [1, 0], sizes = [1, 128], strides = [1, 1]} : vector<4x128xf32> to vector<1x128xf32>
    %32 = vector.broadcast %30 : f32 to vector<1x128xf32>
    %33 = arith.mulf %32, %31 : vector<1x128xf32>
    %34 = arith.addf %29, %33 : vector<1x128xf32>
    %c6 = arith.constant 6 : index
    %35 = memref.load %arg1[%c6] : memref<16xf32, #tpu.memory_space<smem>>
    %36 = vector.extract_strided_slice %0 {offsets = [2, 0], sizes = [1, 128], strides = [1, 1]} : vector<4x128xf32> to vector<1x128xf32>
    %37 = vector.broadcast %35 : f32 to vector<1x128xf32>
    %38 = arith.mulf %37, %36 : vector<1x128xf32>
    %39 = arith.addf %34, %38 : vector<1x128xf32>
    %c7 = arith.constant 7 : index
    %40 = memref.load %arg1[%c7] : memref<16xf32, #tpu.memory_space<smem>>
    %41 = vector.extract_strided_slice %0 {offsets = [3, 0], sizes = [1, 128], strides = [1, 1]} : vector<4x128xf32> to vector<1x128xf32>
    %42 = vector.broadcast %40 : f32 to vector<1x128xf32>
    %43 = arith.mulf %42, %41 : vector<1x128xf32>
    %44 = arith.addf %39, %43 : vector<1x128xf32>
    %c2_4 = arith.constant 2 : index
    %45 = memref.load %arg2[%c2_4] : memref<4xf32, #tpu.memory_space<smem>>
    %c8 = arith.constant 8 : index
    %46 = memref.load %arg1[%c8] : memref<16xf32, #tpu.memory_space<smem>>
    %47 = vector.extract_strided_slice %0 {offsets = [0, 0], sizes = [1, 128], strides = [1, 1]} : vector<4x128xf32> to vector<1x128xf32>
    %48 = vector.broadcast %46 : f32 to vector<1x128xf32>
    %49 = arith.mulf %48, %47 : vector<1x128xf32>
    %50 = vector.broadcast %45 : f32 to vector<1x128xf32>
    %51 = arith.addf %50, %49 : vector<1x128xf32>
    %c9 = arith.constant 9 : index
    %52 = memref.load %arg1[%c9] : memref<16xf32, #tpu.memory_space<smem>>
    %53 = vector.extract_strided_slice %0 {offsets = [1, 0], sizes = [1, 128], strides = [1, 1]} : vector<4x128xf32> to vector<1x128xf32>
    %54 = vector.broadcast %52 : f32 to vector<1x128xf32>
    %55 = arith.mulf %54, %53 : vector<1x128xf32>
    %56 = arith.addf %51, %55 : vector<1x128xf32>
    %c10 = arith.constant 10 : index
    %57 = memref.load %arg1[%c10] : memref<16xf32, #tpu.memory_space<smem>>
    %58 = vector.extract_strided_slice %0 {offsets = [2, 0], sizes = [1, 128], strides = [1, 1]} : vector<4x128xf32> to vector<1x128xf32>
    %59 = vector.broadcast %57 : f32 to vector<1x128xf32>
    %60 = arith.mulf %59, %58 : vector<1x128xf32>
    %61 = arith.addf %56, %60 : vector<1x128xf32>
    %c11 = arith.constant 11 : index
    %62 = memref.load %arg1[%c11] : memref<16xf32, #tpu.memory_space<smem>>
    %63 = vector.extract_strided_slice %0 {offsets = [3, 0], sizes = [1, 128], strides = [1, 1]} : vector<4x128xf32> to vector<1x128xf32>
    %64 = vector.broadcast %62 : f32 to vector<1x128xf32>
    %65 = arith.mulf %64, %63 : vector<1x128xf32>
    %66 = arith.addf %61, %65 : vector<1x128xf32>
    %c3_5 = arith.constant 3 : index
    %67 = memref.load %arg2[%c3_5] : memref<4xf32, #tpu.memory_space<smem>>
    %c12 = arith.constant 12 : index
    %68 = memref.load %arg1[%c12] : memref<16xf32, #tpu.memory_space<smem>>
    %69 = vector.extract_strided_slice %0 {offsets = [0, 0], sizes = [1, 128], strides = [1, 1]} : vector<4x128xf32> to vector<1x128xf32>
    %70 = vector.broadcast %68 : f32 to vector<1x128xf32>
    %71 = arith.mulf %70, %69 : vector<1x128xf32>
    %72 = vector.broadcast %67 : f32 to vector<1x128xf32>
    %73 = arith.addf %72, %71 : vector<1x128xf32>
    %c13 = arith.constant 13 : index
    %74 = memref.load %arg1[%c13] : memref<16xf32, #tpu.memory_space<smem>>
    %75 = vector.extract_strided_slice %0 {offsets = [1, 0], sizes = [1, 128], strides = [1, 1]} : vector<4x128xf32> to vector<1x128xf32>
    %76 = vector.broadcast %74 : f32 to vector<1x128xf32>
    %77 = arith.mulf %76, %75 : vector<1x128xf32>
    %78 = arith.addf %73, %77 : vector<1x128xf32>
    %c14 = arith.constant 14 : index
    %79 = memref.load %arg1[%c14] : memref<16xf32, #tpu.memory_space<smem>>
    %80 = vector.extract_strided_slice %0 {offsets = [2, 0], sizes = [1, 128], strides = [1, 1]} : vector<4x128xf32> to vector<1x128xf32>
    %81 = vector.broadcast %79 : f32 to vector<1x128xf32>
    %82 = arith.mulf %81, %80 : vector<1x128xf32>
    %83 = arith.addf %78, %82 : vector<1x128xf32>
    %c15 = arith.constant 15 : index
    %84 = memref.load %arg1[%c15] : memref<16xf32, #tpu.memory_space<smem>>
    %85 = vector.extract_strided_slice %0 {offsets = [3, 0], sizes = [1, 128], strides = [1, 1]} : vector<4x128xf32> to vector<1x128xf32>
    %86 = vector.broadcast %84 : f32 to vector<1x128xf32>
    %87 = arith.mulf %86, %85 : vector<1x128xf32>
    %88 = arith.addf %83, %87 : vector<1x128xf32>
    %89 = tpu.concatenate %22, %44, %66, %88 in 0 : vector<1x128xf32>, vector<1x128xf32>, vector<1x128xf32>, vector<1x128xf32> -> vector<4x128xf32>
    %cst = arith.constant 0.000000e+00 : f32
    %90 = vector.broadcast %cst : f32 to vector<4x128xf32>
    %91 = arith.subf %90, %89 : vector<4x128xf32>
    %92 = math.exp %91 : vector<4x128xf32>
    %cst_6 = arith.constant 1.000000e+00 : f32
    %93 = vector.broadcast %cst_6 : f32 to vector<4x128xf32>
    %94 = arith.addf %93, %92 : vector<4x128xf32>
    %cst_7 = arith.constant 1.000000e+00 : f32
    %95 = vector.broadcast %cst_7 : f32 to vector<4x128xf32>
    %96 = arith.divf %95, %94 : vector<4x128xf32>
    %c0_8 = arith.constant 0 : index
    %c0_9 = arith.constant 0 : index
    %97 = vector.load %arg4[%c0_8, %c0_9] : memref<4x128xf32, #tpu.memory_space<vmem>>, vector<4x128xf32>
    tpu.vector_store %arg4[%c0_8, %c0_9], %96 {strides = array<i32>} : memref<4x128xf32, #tpu.memory_space<vmem>>, vector<4x128xf32>,
    return
  }
  func.func @transform_0(%arg0: i32, %arg1: memref<16xf32, #tpu.memory_space<smem>>, %arg2: memref<4xf32, #tpu.memory_space<smem>>) -> (i32, i32) {
    %c0_i32 = arith.constant 0 : i32
    %c0_i32_0 = arith.constant 0 : i32
    return %c0_i32, %arg0 : i32, i32
  }
  func.func @transform_1(%arg0: i32, %arg1: memref<16xf32, #tpu.memory_space<smem>>, %arg2: memref<4xf32, #tpu.memory_space<smem>>) -> (i32, i32) {
    %c0_i32 = arith.constant 0 : i32
    %c0_i32_0 = arith.constant 0 : i32
    return %c0_i32, %arg0 : i32, i32
  }
}

</mosaic_0001>

<bundles_post_ra>
// kernel: tpu_custom_call.1
= control target key start
LH: loop header
LB: loop body
LE: loop exit
PB: predicated region body
PF: predicated region fallthrough
CT: control target
= control target key end

     0   :  { %s347_s0 = inlined_call_operand.hbm [shape: f32[16], index: 0, kind: input, shape index: {}]   ;;  %s348_s2 = inlined_call_operand.vmem [shape: f32[4,128], index: 2, kind: input, shape index: {}]   ;;  %s349_s3 = inlined_call_operand.hbm [shape: f32[4,128], index: 3, kind: output, shape index: {}]   ;;  %s350_s1 = inlined_call_operand.vmem [shape: f32[4], index: 1, kind: input, shape index: {}]  }
   0x1   :  { %s189_s14 = scalar_lea.hbm %s347_s0, 16 }
   0x2   :  { %p190_p0 = scmp.ne.s32.totalorder %s347_s0, %s189_s14  ;;  %p193_p1 = scmp.lt.u32.totalorder %s189_s14, %s347_s0 }
   0x4   :  { %p195_p2 = pnand %p193_p1, %p190_p0 }
   0x6   :  { %198 = shalt.err (!%p195_p2)  }
   0x7   :  { %s237_s19 = smov [#allocation3]   ;;  %s10_s24 = sshll.u32 %s350_s1, 4  ;;  %s11_s24 = int_to_ptr.vmem [resolvable:$true] %s10_s24 }
   0x8   :  { %9 = dma.hbm_to_smem %s347_s0, 16, %s237_s19, [#allocation2] }
   0x9   :  { %s199_s25 = scalar_lea.vmem %s11_s24, 16  ;;  %p204_p4 = scmp.lt.s32.totalorder %s11_s24, %s11_s24 }
   0xa   :  { %p200_p3 = scmp.ne.s32.totalorder %s11_s24, %s199_s25  ;;  %p205_p5 = scmp.lt.s32.totalorder %s199_s25, %s199_s25 }
   0xc   :  { %p206_p6 = por %p205_p5, %p204_p4 }
   0xe   :  { %p207_p7 = pnand %p206_p6, %p200_p3 }
  0x10   :  { %210 = shalt.err (!%p207_p7)  }
  0x11   :  { %s238_s26 = smov [#allocation4]  }
  0x12   :  { %13 = dma.vmem_to_smem %s11_s24, 16, %s238_s26, [#allocation2] }
  0x13   :  { %233 = dma.done.wait [#allocation2], 32 }
  0x14   :  { %234 = vsyncadd [#allocation2], 4294967264 }
  0x15   :  { %15 = sfence }
  0x16   :  { %s20_s27 = sld [smem:[#allocation4]]  ;;  %s164_s0 = sld [smem:[#allocation3 + $0x1]] }
  0x17   :  { %s21_s28 = sld [smem:[#allocation3]]  ;;  %s165_s29 = sld [smem:[#allocation3 + $0x2]] }
  0x18   :  { %s166_s30 = sld [smem:[#allocation3 + $0x3]]  ;;  %s275_s4 = sld [smem:[#allocation4 + $0x1]] }
  0x19   :  { %s168_s1 = sld [smem:[#allocation3 + $0x4]]  ;;  %s169_s5 = sld [smem:[#allocation3 + $0x5]] }
  0x1a   :  { %16 = vsyncpa [#allocation6], 0  ;;  %s277_s6 = sld [smem:[#allocation3 + $0x6]]  ;;  %s279_s7 = sld [smem:[#allocation3 + $0x7]]  ;;  %v288_v0 = vld [vmem:[%s348_s2] sm:$0xf] }
  0x1b   :  { %s281_s8 = sld [smem:[#allocation4 + $0x2]]  ;;  %s283_s9 = sld [smem:[#allocation3 + $0x8]]  ;;  %vm137_vm0 = vcmask 1040384   ;;  %vm139_vm1 = vcmask 1041408   ;;  %vm141_vm2 = vcmask 1042432  }
  0x1c   :  { %v24_v2 = vstv %s20_s27  ;;  %s290_s12 = sld [smem:[#allocation3 + $0x9]]  ;;  %v27_v4 = vstv %s164_s0  ;;  %s293_s13 = sld [smem:[#allocation3 + $0xa]] }
  0x1d   :  { %v22_v1 = vstv %s21_s28  ;;  %v34_v5 = vstv %s165_s29  ;;  %s295_s14 = sld [smem:[#allocation3 + $0xb]]  ;;  %v28_v6 = vmul.f32 %v27_v4, %v288_v0  ;;  %s302_s15 = sld [smem:[#allocation3 + $0xc]] }
  0x1e   :  { %v23_v3 = vmul.f32 %v22_v1, %v288_v0  ;;  %v35_v7 = vmul.f32 %v34_v5, %v288_v0  ;;  %v41_v8 = vstv %s166_s30  ;;  %s299_s2 = sld [smem:[#allocation4 + $0x3]]  ;;  %v51_v11 = vstv %s275_s4  ;;  %s304_s16 = sld [smem:[#allocation3 + $0xd]] }
  0x1f   :  { %v49_v10 = vstv %s168_s1  ;;  %v54_v12 = vstv %s169_s5  ;;  %v30_v13 = vrot.slane %v28_v6, 1  ;;  %v42_v14 = vmul.f32 %v41_v8, %v288_v0  ;;  %s312_s17 = sld [smem:[#allocation3 + $0xe]]  ;;  %s314_s18 = sld [smem:[#allocation3 + $0xf]] }
  0x20   :  { %v25_v9 = vadd.f32 %v24_v2, %v23_v3  ;;  %v50_v15 = vmul.f32 %v49_v10, %v288_v0  ;;  %v55_v16 = vmul.f32 %v54_v12, %v288_v0  ;;  %v37_v17 = vrot.slane %v35_v7, 2  ;;  %s239_s19 = smov [#allocation5]  }
  0x21   :  { %v61_v18 = vstv %s277_s6  ;;  %v68_v19 = vstv %s279_s7  ;;  %v76_v20 = vstv %s283_s9  ;;  %v78_v27 = vstv %s281_s8  ;;  %s156_s20 = sshll.u32 %s239_s19, 4  ;;  %s157_s20 = int_to_ptr.vmem [resolvable:$true] %s156_s20 }
  0x22   :  { %v32_v21 = vadd.f32 %v30_v13, %v25_v9  ;;  %v52_v22 = vadd.f32 %v51_v11, %v50_v15  ;;  %v57_v23 = vrot.slane %v55_v16, 1  ;;  %v62_v24 = vmul.f32 %v61_v18, %v288_v0  ;;  %s211_s21 = scalar_lea.vmem %s157_s20, 64  ;;  %p216_p9 = scmp.lt.s32.totalorder %s157_s20, %s157_s20 }
  0x23   :  { %v69_v25 = vmul.f32 %v68_v19, %v288_v0  ;;  %v77_v26 = vmul.f32 %v76_v20, %v288_v0  ;;  %v81_v28 = vstv %s290_s12  ;;  %v44_v29 = vrot.slane %v42_v14, 3  ;;  %p212_p8 = scmp.ne.s32.totalorder %s157_s20, %s211_s21  ;;  %p217_p10 = scmp.lt.s32.totalorder %s211_s21, %s211_s21 }
  0x24   :  { %v59_v30 = vadd.f32 %v57_v23, %v52_v22  ;;  %v64_v31 = vrot.slane %v62_v24, 2  ;;  %v82_v32 = vmul.f32 %v81_v28, %v288_v0  ;;  %v88_v35 = vstv %s293_s13 }
  0x25   :  { %v71_v33 = vrot.slane %v69_v25, 3  ;;  %v79_v34 = vadd.f32 %v78_v27, %v77_v26  ;;  %v95_v36 = vstv %s295_s14  ;;  %v39_v37 = vadd.f32 %v37_v17, %v32_v21  ;;  %p218_p11 = por %p217_p10, %p216_p9 }
  0x26   :  { %v66_v38 = vadd.f32 %v64_v31, %v59_v30  ;;  %v84_v39 = vrot.slane %v82_v32, 1  ;;  %v89_v40 = vmul.f32 %v88_v35, %v288_v0  ;;  %v96_v41 = vmul.f32 %v95_v36, %v288_v0 }
  0x27   :  { %v103_v42 = vstv %s302_s15  ;;  %v105_v43 = vstv %s299_s2  ;;  %v108_v44 = vstv %s304_s16  ;;  %v115_v51 = vstv %s312_s17  ;;  %p219_p12 = pnand %p218_p11, %p212_p8 }
  0x28   :  { %v73_v45 = vadd.f32 %v71_v33, %v66_v38  ;;  %v86_v46 = vadd.f32 %v84_v39, %v79_v34  ;;  %v91_v47 = vrot.slane %v89_v40, 2  ;;  %v104_v48 = vmul.f32 %v103_v42, %v288_v0 }
  0x29   :  { %v98_v49 = vrot.slane %v96_v41, 3  ;;  %v109_v50 = vmul.f32 %v108_v44, %v288_v0  ;;  %v122_v52 = vstv %s314_s18  ;;  %v116_v55 = vmul.f32 %v115_v51, %v288_v0 }
  0x2a   :  { %v93_v53 = vadd.f32 %v91_v47, %v86_v46  ;;  %v106_v54 = vadd.f32 %v105_v43, %v104_v48  ;;  %v123_v56 = vmul.f32 %v122_v52, %v288_v0  ;;  %v46_v57 = vadd.f32 %v44_v29, %v39_v37 }
  0x2b   :  { %v111_v58 = vrot.slane %v109_v50, 1  ;;  %v129_v59 = vrot.slane %v73_v45, 7  ;;  %v118_v61 = vrot.slane %v116_v55, 2 }
  0x2c   :  { %v100_v60 = vadd.f32 %v98_v49, %v93_v53  ;;  %v125_v63 = vrot.slane %v123_v56, 3 }
  0x2d   :  { %v113_v62 = vadd.f32 %v111_v58, %v106_v54  ;;  %v138_v3 = vsel %vm137_vm0, %v46_v57, %v129_v59 }
  0x2e   :  { %v132_v1 = vrot.slane %v100_v60, 6 }
  0x2f   :  { %v120_v2 = vadd.f32 %v118_v61, %v113_v62 }
  0x30   :  { %v140_v5 = vsel %vm139_vm1, %v138_v3, %v132_v1 }
  0x31   :  { %v127_v4 = vadd.f32 %v125_v63, %v120_v2 }
  0x33   :  { %v135_v6 = vrot.slane %v127_v4, 5 }
  0x35   :  { %v142_v7 = vsel %vm141_vm2, %v140_v5, %v135_v6 }
  0x36   :  { %v143_v8 = vsub.f32 0.0, %v142_v7 }
  0x38   :  { %v144_v9 = vmul.f32 1.442695, %v143_v8 }
  0x3a   :  { %185 = vpow2.f32 %v144_v9 }
  0x44   :  { %v186_v0 = vpop.eup %185 }
  0x45   :  { %v146_v10 = vadd.f32 1.0, %v186_v0 }
  0x47   :  { %187 = vrcp.f32 %v146_v10 }
  0x51   :  { %v188_v11 = vpop.eup %187 }
  0x52   :  { %149 = vst [vmem:[#allocation5] sm:$0xf] %v188_v11 }
  0x53   :  { %222 = shalt.err (!%p219_p12)
}
  0x54   :  { %s223_s24 = scalar_lea.hbm %s349_s3, 64 }
  0x55   :  { %p224_p13 = scmp.ne.s32.totalorder %s349_s3, %s223_s24  ;;  %p227_p0 = scmp.lt.u32.totalorder %s223_s24, %s349_s3 }
  0x57   :  { %p229_p1 = pnand %p227_p0, %p224_p13 }
  0x59   :  { %232 = shalt.err (!%p229_p1)
}
  0x5a   :  { %159 = dma.vmem_to_hbm [thread:$0]  %s157_s20, 64, %s349_s3, [#allocation6]  }
  0x5b   :  { %235 = dma.done.wait [#allocation6], 64  }
  0x5c   :  { %236 = vsyncadd [#allocation6], 4294967232 }
  0x5d   :  { %163 = vsyncpa [#allocation6], 1 }

</bundles_post_ra>
